<compile_context>
chip_gen: v6e
topology: v6e:2x2x1
jax: 0.10.0
libtpu: 0.0.40
codegen_flags: <defaults>
</compile_context>

<pallas_src>
import functools

import jax
import jax.numpy as jnp
from jax.experimental import pallas as pl
from jax.experimental.pallas import tpu as pltpu


def _round_up(x, m):
    return ((x + m - 1) // m) * m


def _choose_block_b(b, c, itemsize):
    """Batch block size: VMEM-budget driven, dtype-aligned sublane multiple."""
    mult = max(8, 32 // max(int(itemsize), 1))        # f32->8, bf16->16, i8->32
    b_ceil = _round_up(b, mult)
    # Per-row VMEM bytes:
    #   2x double-buffered logits rows (native dtype)
    #   2x double-buffered (block_b, 1) targets + alpha_t rows, each padded to a
    #     full 128-lane tile in VMEM -> 512 B/row apiece
    #   ~4 block-sized f32 temporaries (shifted, exp, mask, selects)
    per_row = 2 * c * itemsize + 2 * 2 * 512 + 4 * c * 4
    budget = 24 * 1024 * 1024                         # leave headroom under 48 MiB limit
    bb = budget // max(per_row, 1)
    bb = max(mult, min(bb, b_ceil))
    return (bb // mult) * mult


def _focal_per_row(logits, targets, alpha_t, gamma):
    """Per-row focal loss.

    logits (bb, C) f32, targets (bb, 1) i32, alpha_t (bb, 1) f32 -> (bb, 1) f32.
    """
    bb, c = logits.shape

    row_max = jnp.max(logits, axis=-1, keepdims=True)              # (bb, 1)  XLU
    shifted = logits - row_max                                     # (bb, C)
    sum_exp = jnp.sum(jnp.exp(shifted), axis=-1, keepdims=True)    # (bb, 1)  EUP+XLU

    # Single masked select + lane reduce: the target's shifted logit.
    class_ids = jax.lax.broadcasted_iota(jnp.int32, (1, c), 1)     # (1, C)
    mask = class_ids == targets                                    # (bb, C) via broadcast
    tgt_shifted = jnp.sum(jnp.where(mask, shifted, 0.0),
                          axis=-1, keepdims=True)                  # (bb, 1)

    ce = jnp.log(sum_exp) - tgt_shifted                            # -log p_t >= 0
    pt = jnp.exp(-ce)                                              # exact, (bb,1) EUP op

    g = float(gamma)
    if g.is_integer() and g >= 0:
        focal_factor = jnp.ones_like(pt)
        for _ in range(int(g)):
            focal_factor = focal_factor * (1.0 - pt)
    else:
        focal_factor = (1.0 - pt) ** g

    return alpha_t * focal_factor * ce                             # (bb, 1)


def _focal_partial_sum_kernel(logits_ref, targets_ref, alpha_ref, out_ref, *,
                              gamma, n_valid, block_b):
    """One batch block -> one (8, 128) tile replicated with the block's sum."""
    i = pl.program_id(0)
    focal = _focal_per_row(logits_ref[...].astype(jnp.float32),
                           targets_ref[...],
                           alpha_ref[...],
                           gamma)                                  # (bb, 1)

    # Kill garbage rows of the ragged last block (no wrapper-side padding).
    row_ids = i * block_b + jax.lax.broadcasted_iota(jnp.int32, focal.shape, 0)
    focal = jnp.where(row_ids < n_valid, focal, 0.0)

    block_sum = jnp.sum(focal, axis=0, keepdims=True)              # (1, 1)
    out_ref[...] = jnp.broadcast_to(block_sum, (8, 128))           # unmasked lane-dense vst


def _focal_rows_kernel(logits_ref, targets_ref, alpha_ref, out_ref, *, gamma):
    """reduction='none': per-sample focal loss for this batch block."""
    # TODO(synk): for very small C a lane-dense (1, block_b) output layout would
    # avoid single-lane masked stores; kept (block_b, 1) for simplicity.
    out_ref[...] = _focal_per_row(logits_ref[...].astype(jnp.float32),
                                  targets_ref[...],
                                  alpha_ref[...],
                                  gamma)


def focal_loss(logits, targets, alpha=None, gamma=2.0, reduction="mean"):
    """JAX/Pallas equivalent of FocalLoss.forward(inputs, targets)."""
    B, C = logits.shape
    targets = targets.astype(jnp.int32)
    targets2d = targets.reshape(B, 1)

    # Gather alpha[targets] on the XLA side (fuses into the input pipeline);
    # no (1, C) alpha input / in-kernel select+reduce needed.
    if alpha is None:
        alpha_t = jnp.ones((B, 1), jnp.float32)
    else:
        alpha_t = jnp.take(alpha.astype(jnp.float32), targets).reshape(B, 1)

    block_b = _choose_block_b(B, C, jnp.dtype(logits.dtype).itemsize)
    num_blocks = pl.cdiv(B, block_b)                 # ragged last block is masked

    compiler_params = pltpu.CompilerParams(
        dimension_semantics=("parallel",),           # independent blocks -> 2-TC on v7x
        vmem_limit_bytes=48 * 1024 * 1024,
    )
    in_specs = [
        pl.BlockSpec((block_b, C), lambda i: (i, 0)),   # logits block (native dtype)
        pl.BlockSpec((block_b, 1), lambda i: (i, 0)),   # targets block
        pl.BlockSpec((block_b, 1), lambda i: (i, 0)),   # alpha[targets] block
    ]

    if reduction == "none":
        out = pl.pallas_call(
            functools.partial(_focal_rows_kernel, gamma=gamma),
            out_shape=jax.ShapeDtypeStruct((B, 1), jnp.float32),
            grid=(num_blocks,),
            in_specs=in_specs,
            out_specs=pl.BlockSpec((block_b, 1), lambda i: (i, 0)),
            compiler_params=compiler_params,
        )(logits, targets2d, alpha_t)
        return out[:, 0]

    out = pl.pallas_call(
        functools.partial(_focal_partial_sum_kernel, gamma=gamma,
                          n_valid=B, block_b=block_b),
        out_shape=jax.ShapeDtypeStruct((8 * num_blocks, 128), jnp.float32),
        grid=(num_blocks,),
        in_specs=in_specs,
        out_specs=pl.BlockSpec((8, 128), lambda i: (i, 0)),
        compiler_params=compiler_params,
    )(logits, targets2d, alpha_t)

    total = jnp.sum(out[::8, 0])                     # one replicated tile per block
    if reduction == "sum":
        return total
    return total / B                                 # 'mean' (default)


def _focal_loss_ref(logits, targets, alpha, gamma):
    """Pure-JAX per-sample reference mirroring the PyTorch module."""
    logp = jax.nn.log_softmax(logits.astype(jnp.float32), axis=-1)
    ce = -jnp.take_along_axis(logp, targets[:, None], axis=-1)[:, 0]
    pt = jnp.exp(-ce)
    fl = (1.0 - pt) ** gamma * ce
    if alpha is not None:
        fl = alpha[targets] * fl
    return fl


if __name__ == "__main__":
    key = jax.random.PRNGKey(0)
    k1, k2 = jax.random.split(key, 2)

    B, C = 16, 8  # small shapes consistent with the classifier head
    logits = jax.random.normal(k1, (B, C), dtype=jnp.float32)
    targets = jax.random.randint(k2, (B,), 0, C, dtype=jnp.int32)
    class_weights = jnp.linspace(0.5, 1.5, C, dtype=jnp.float32)  # FocalLoss alpha

    fl_ref = _focal_loss_ref(logits, targets, class_weights, 2.0)

    loss = focal_loss(logits, targets, alpha=class_weights, gamma=2.0,
                      reduction="mean")
    loss = jax.block_until_ready(loss)
    assert jnp.allclose(loss, jnp.mean(fl_ref), rtol=1e-4, atol=1e-6), (
        loss, jnp.mean(fl_ref))

    per_sample = focal_loss(logits, targets, alpha=class_weights, gamma=2.0,
                            reduction="none")
    per_sample = jax.block_until_ready(per_sample)
    assert jnp.allclose(per_sample, fl_ref, rtol=1e-4, atol=1e-6)

    print("KERNEL_OK")
</pallas_src>

<mosaic_0001>
module attributes {stable_mosaic.version = 11 : i64} {
  func.func @_focal_partial_sum_kernel(%arg0: i32, %arg1: memref<16x8xf32, #tpu.memory_space<vmem>>, %arg2: memref<16x1xi32, #tpu.memory_space<vmem>>, %arg3: memref<16x1xf32, #tpu.memory_space<vmem>>, %arg4: memref<8x128xf32, #tpu.memory_space<vmem>>) attributes {dimension_semantics = [#tpu.dimension_semantics<parallel>], iteration_bounds = array<i64: 1>, scalar_prefetch = 0 : i64, scratch_operands = 0 : i64, tpu.core_type = #tpu.core_type<tc>, window_params = [{transform_indices = @transform_0, window_bounds = array<i64: 16, 8>}, {transform_indices = @transform_1, window_bounds = array<i64: 16, 1>}, {transform_indices = @transform_2, window_bounds = array<i64: 16, 1>}, {transform_indices = @transform_3, window_bounds = array<i64: 8, 128>}]} {
    %c0 = arith.constant 0 : index
    %c0_0 = arith.constant 0 : index
    %0 = vector.load %arg1[%c0, %c0_0] : memref<16x8xf32, #tpu.memory_space<vmem>>, vector<16x8xf32>
    %c0_1 = arith.constant 0 : index
    %c0_2 = arith.constant 0 : index
    %1 = vector.load %arg2[%c0_1, %c0_2] : memref<16x1xi32, #tpu.memory_space<vmem>>, vector<16x1xi32>
    %c0_3 = arith.constant 0 : index
    %c0_4 = arith.constant 0 : index
    %2 = vector.load %arg3[%c0_3, %c0_4] : memref<16x1xf32, #tpu.memory_space<vmem>>, vector<16x1xf32>
    %cst = arith.constant dense<0xFF800000> : vector<16xf32>
    %3 = vector.multi_reduction <maximumf>, %0, %cst [1] : vector<16x8xf32> to vector<16xf32>
    %4 = vector.shape_cast %3 : vector<16xf32> to vector<16x1xf32>
    %5 = vector.broadcast %4 : vector<16x1xf32> to vector<16x8xf32>
    %6 = arith.subf %0, %5 : vector<16x8xf32>
    %7 = math.exp %6 : vector<16x8xf32>
    %cst_5 = arith.constant dense<0.000000e+00> : vector<16xf32>
    %8 = vector.multi_reduction <add>, %7, %cst_5 [1] : vector<16x8xf32> to vector<16xf32>
    %9 = vector.shape_cast %8 : vector<16xf32> to vector<16x1xf32>
    %10 = tpu.iota {dimensions = array<i32: 1>} : vector<1x8xi32>
    %11 = vector.broadcast %10 : vector<1x8xi32> to vector<16x8xi32>
    %12 = vector.broadcast %1 : vector<16x1xi32> to vector<16x8xi32>
    %13 = arith.cmpi eq, %11, %12 : vector<16x8xi32>
    %cst_6 = arith.constant 0.000000e+00 : f32
    %14 = vector.broadcast %cst_6 : f32 to vector<16x8xf32>
    %15 = arith.select %13, %6, %14 : vector<16x8xi1>, vector<16x8xf32>
    %cst_7 = arith.constant dense<0.000000e+00> : vector<16xf32>
    %16 = vector.multi_reduction <add>, %15, %cst_7 [1] : vector<16x8xf32> to vector<16xf32>
    %17 = vector.shape_cast %16 : vector<16xf32> to vector<16x1xf32>
    %18 = math.log %9 : vector<16x1xf32>
    %19 = arith.subf %18, %17 : vector<16x1xf32>
    %cst_8 = arith.constant 0.000000e+00 : f32
    %20 = vector.broadcast %cst_8 : f32 to vector<16x1xf32>
    %21 = arith.subf %20, %19 : vector<16x1xf32>
    %22 = math.exp %21 : vector<16x1xf32>
    %cst_9 = arith.constant 1.000000e+00 : f32
    %23 = vector.broadcast %cst_9 : f32 to vector<16x1xf32>
    %cst_10 = arith.constant 1.000000e+00 : f32
    %24 = vector.broadcast %cst_10 : f32 to vector<16x1xf32>
    %25 = arith.subf %24, %22 : vector<16x1xf32>
    %26 = arith.mulf %23, %25 : vector<16x1xf32>
    %cst_11 = arith.constant 1.000000e+00 : f32
    %27 = vector.broadcast %cst_11 : f32 to vector<16x1xf32>
    %28 = arith.subf %27, %22 : vector<16x1xf32>
    %29 = arith.mulf %26, %28 : vector<16x1xf32>
    %30 = arith.mulf %2, %29 : vector<16x1xf32>
    %31 = arith.mulf %30, %19 : vector<16x1xf32>
    %c16_i32 = arith.constant 16 : i32
    %32 = arith.muli %arg0, %c16_i32 : i32
    %33 = tpu.iota {dimensions = array<i32: 0>} : vector<16x1xi32>
    %34 = vector.broadcast %32 : i32 to vector<16x1xi32>
    %35 = arith.addi %34, %33 : vector<16x1xi32>
    %c16_i32_12 = arith.constant 16 : i32
    %36 = vector.broadcast %c16_i32_12 : i32 to vector<16x1xi32>
    %37 = arith.cmpi slt, %35, %36 : vector<16x1xi32>
    %cst_13 = arith.constant 0.000000e+00 : f32
    %38 = vector.broadcast %cst_13 : f32 to vector<16x1xf32>
    %39 = arith.select %37, %31, %38 : vector<16x1xi1>, vector<16x1xf32>
    %cst_14 = arith.constant dense<0.000000e+00> : vector<1xf32>
    %40 = vector.multi_reduction <add>, %39, %cst_14 [0] : vector<16x1xf32> to vector<1xf32>
    %41 = vector.shape_cast %40 : vector<1xf32> to vector<1x1xf32>
    %42 = vector.shape_cast %41 : vector<1x1xf32> to vector<1x1xf32>
    %43 = vector.broadcast %42 : vector<1x1xf32> to vector<8x128xf32>
    %c0_15 = arith.constant 0 : index
    %c0_16 = arith.constant 0 : index
    %44 = vector.load %arg4[%c0_15, %c0_16] : memref<8x128xf32, #tpu.memory_space<vmem>>, vector<8x128xf32>
    tpu.vector_store %arg4[%c0_15, %c0_16], %43 {strides = array<i32>} : memref<8x128xf32, #tpu.memory_space<vmem>>, vector<8x128xf32>,
    return
  }
  func.func @transform_0(%arg0: i32) -> (i32, i32) {
    %c0_i32 = arith.constant 0 : i32
    %c0_i32_0 = arith.constant 0 : i32
    return %arg0, %c0_i32 : i32, i32
  }
  func.func @transform_1(%arg0: i32) -> (i32, i32) {
    %c0_i32 = arith.constant 0 : i32
    %c0_i32_0 = arith.constant 0 : i32
    return %arg0, %c0_i32 : i32, i32
  }
  func.func @transform_2(%arg0: i32) -> (i32, i32) {
    %c0_i32 = arith.constant 0 : i32
    %c0_i32_0 = arith.constant 0 : i32
    return %arg0, %c0_i32 : i32, i32
  }
  func.func @transform_3(%arg0: i32) -> (i32, i32) {
    %c0_i32 = arith.constant 0 : i32
    %c0_i32_0 = arith.constant 0 : i32
    return %arg0, %c0_i32 : i32, i32
  }
}

</mosaic_0001>

<bundles_post_ra>
// kernel: tpu_custom_call.1
= control target key start
LH: loop header
LB: loop body
LE: loop exit
PB: predicated region body
PF: predicated region fallthrough
CT: control target
= control target key end

     0   :  { %vm21_vm0 = vcmask 64512   ;;  %v157_v4 = vmov 0   ;;  %s206_s0 = inlined_call_operand.vmem [shape: f32[16,8], index: 0, kind: input, shape index: {}]   ;;  %s207_s1 = inlined_call_operand.vmem [shape: s32[16,1], index: 1, kind: input, shape index: {}]   ;;  %s208_s2 = inlined_call_operand.vmem [shape: f32[16,1], index: 2, kind: input, shape index: {}]   ;;  %s209_s3 = inlined_call_operand.hbm [shape: f32[8,128], index: 3, kind: output, shape index: {}]  }
   0x1   :  { %v15_v0 = vld [vmem:[%s206_s0] sm:$0xff]  ;;  %v16_v1 = vld [vmem:[%s206_s0 + $0x8] sm:$0xff]  ;;  %121 = vset.pattern.permute.xlu1 %v157_v4  ;;  %122 = vset.pattern.permute.xlu0 %v157_v4 }
   0x2   :  { %v17_v2 = vld [vmem:[%s207_s1] sm:$0xff]  ;;  %v22_v3 = vsel %vm21_vm0, %v15_v0, -inf }
   0x3   :  { %8 = vsyncpa [#allocation3], 0  ;;  %23 = vmax.xlane.f32.xlu0 %v22_v3  ;;  %43 = vperm.xlu1 %121, %v17_v2   ;;  %v25_v5 = vsel %vm21_vm0, %v16_v1, -inf  ;;  %v18_v6 = vld [vmem:[%s207_s1 + $0x8] sm:$0xff]  ;;  %v40_v13 = vlaneseq  ;;  %v19_v41 = vld [vmem:[%s208_s2] sm:$0xff]  ;;  %vm89_vm3 = vcmask 7168  }
   0x4   :  { %v20_v46 = vld [vmem:[%s208_s2 + $0x8] sm:$0xff]  ;;  %s158_s22 = smov [#allocation2]  }
   0x5   :  { %v41_v15 = vand.u32 127, %v40_v13  ;;  %s111_s23 = sshll.u32 %s158_s22, 4  ;;  %s112_s23 = int_to_ptr.vmem [resolvable:$true] %s111_s23 }
   0x6   :  { %s135_s2 = scalar_lea.vmem %s112_s23, 128  ;;  %p140_p1 = scmp.lt.s32.totalorder %s112_s23, %s112_s23 }
   0x7   :  { %26 = vmax.xlane.f32.xlu0 %v25_v5  ;;  %46 = vperm.xlu1 %121, %v18_v6   ;;  %p136_p0 = scmp.ne.s32.totalorder %s112_s23, %s135_s2  ;;  %p141_p2 = scmp.lt.s32.totalorder %s135_s2, %s135_s2 }
   0x9   :  { %p142_p3 = por %p141_p2, %p140_p1 }
   0xb   :  { %p143_p4 = pnand %p142_p3, %p136_p0 }
  0x7e   :  { %v44_v14 = vpop.permute.xlu1 %43 }
  0x7f   :  { %vm48_vm1 = vcmp.eq.s32.totalorder %v41_v15, %v44_v14 }
  0x82   :  { %v47_v17 = vpop.permute.xlu1 %46 }
  0x83   :  { %vm49_vm2 = vcmp.eq.s32.totalorder %v41_v15, %v47_v17 }
  0x8c   :  { %v24_v7 = vpop.xlane.xlu0 %23 }
  0x8d   :  { %v28_v8 = vsub.f32 %v15_v0, %v24_v7 }
  0x8f   :  { %v30_v9 = vmul.f32 1.442695, %v28_v8  ;;  %v50_v19 = vsel %vm48_vm1, %v28_v8, 0.0 }
  0x90   :  { %v27_v10 = vpop.xlane.xlu0 %26  ;;  %v52_v21 = vsel %vm21_vm0, %v50_v19, 0.0 }
  0x91   :  { %123 = vpow2.f32 %v30_v9  ;;  %v29_v11 = vsub.f32 %v16_v1, %v27_v10 }
  0x93   :  { %v32_v12 = vmul.f32 1.442695, %v29_v11  ;;  %v51_v23 = vsel %vm49_vm2, %v29_v11, 0.0 }
  0x94   :  { %v55_v24 = vsel %vm21_vm0, %v51_v23, 0.0 }
  0x95   :  { %125 = vpow2.f32 %v32_v12 }
  0x9e   :  { %v124_v16 = vpop.eup %123 }
  0x9f   :  { %v34_v18 = vsel %vm21_vm0, %v124_v16, 0.0 }
  0xa0   :  { %35 = vadd.xlane.f32.xlu0 %v34_v18 }
  0xa2   :  { %v126_v20 = vpop.eup %125 }
  0xa3   :  { %v37_v22 = vsel %vm21_vm0, %v126_v20, 0.0 }
  0xa4   :  { %53 = vadd.xlane.f32.xlu0 %v52_v21  ;;  %38 = vadd.xlane.f32.xlu1 %v37_v22 }
  0xa8   :  { %56 = vadd.xlane.f32.xlu0 %v55_v24 }
 0x129   :  { %v36_v25 = vpop.xlane.xlu0 %35 }
 0x12a   :  { %127 = vlog2.f32 %v36_v25 }
 0x12d   :  { %v39_v26 = vpop.xlane.xlu1 %38  ;;  %v54_v28 = vpop.xlane.xlu0 %53 }
 0x12e   :  { %129 = vlog2.f32 %v39_v26 }
 0x131   :  { %v57_v34 = vpop.xlane.xlu0 %56 }
 0x137   :  { %v128_v27 = vpop.eup %127 }
 0x138   :  { %v59_v29 = vmul.f32 0.6931472, %v128_v27 }
 0x13a   :  { %v62_v30 = vsub.f32 %v59_v29, %v54_v28 }
 0x13b   :  { %v130_v31 = vpop.eup %129 }
 0x13c   :  { %v64_v32 = vsub.f32 0.0, %v62_v30  ;;  %v61_v33 = vmul.f32 0.6931472, %v130_v31 }
 0x13e   :  { %v66_v35 = vmul.f32 1.442695, %v64_v32  ;;  %v63_v36 = vsub.f32 %v61_v33, %v57_v34 }
 0x140   :  { %131 = vpow2.f32 %v66_v35  ;;  %v65_v37 = vsub.f32 0.0, %v63_v36 }
 0x142   :  { %v68_v38 = vmul.f32 1.442695, %v65_v37 }
 0x144   :  { %133 = vpow2.f32 %v68_v38 }
 0x14d   :  { %v132_v39 = vpop.eup %131 }
 0x14e   :  { %v70_v40 = vsub.f32 1.0, %v132_v39 }
 0x150   :  { %v72_v42 = vmul.f32 %v70_v40, %v70_v40 }
 0x151   :  { %v134_v43 = vpop.eup %133 }
 0x152   :  { %v74_v44 = vmul.f32 %v72_v42, %v19_v41  ;;  %v71_v45 = vsub.f32 1.0, %v134_v43 }
 0x154   :  { %v73_v47 = vmul.f32 %v71_v45, %v71_v45  ;;  %v76_v48 = vmul.f32 %v74_v44, %v62_v30 }
 0x156   :  { %v75_v49 = vmul.f32 %v73_v47, %v20_v46  ;;  %v90_v51 = vsel %vm89_vm3, %v76_v48, 0.0 }
 0x158   :  { %v77_v50 = vmul.f32 %v75_v49, %v63_v36 }
 0x15a   :  { %v91_v52 = vsel %vm89_vm3, %v77_v50, 0.0 }
 0x15b   :  { %v92_v53 = vadd.f32 %v91_v52, %v90_v51 }
 0x15d   :  { %v93_v54 = vrot.slane %v92_v53, 4 }
 0x15f   :  { %v94_v55 = vadd.f32 %v93_v54, %v92_v53 }
 0x161   :  { %v95_v56 = vrot.slane %v94_v55, 2 }
 0x163   :  { %v96_v57 = vadd.f32 %v95_v56, %v94_v55 }
 0x165   :  { %v97_v58 = vrot.slane %v96_v57, 1 }
 0x167   :  { %v98_v59 = vadd.f32 %v97_v58, %v96_v57 }
 0x169   :  { %101 = vperm.xlu0 %122, %v98_v59  }
 0x1e4   :  { %v102_v60 = vpop.permute.xlu0 %101 }
 0x1e5   :  { %104 = vst [vmem:[#allocation2] sm:$0xff] %v102_v60 }
 0x1e6   :  { %146 = shalt.err (!%p143_p4)
}
 0x1e7   :  { %114 = dma.vmem_to_hbm [thread:$0]  %s112_s23, 128, %s209_s3, [#allocation3]  }
 0x1e8   :  { %155 = dma.done.wait [#allocation3], 128  }
 0x1e9   :  { %156 = vsyncadd [#allocation3], 4294967168 }
 0x1ea   :  { %118 = vsyncpa [#allocation3], 1 }

</bundles_post_ra>
